<compile_context>
chip_gen: v7x
topology: tpu7x:2x2x1
jax: 0.10.0
libtpu: 0.0.40
codegen_flags: <defaults>
</compile_context>

<pallas_src>
import functools
import math

import jax
import jax.numpy as jnp
from jax.experimental import pallas as pl
from jax.experimental.pallas import tpu as pltpu


# ----------------------------------------------------------------------------
# Kernels (x and out are viewed as (tile_s, B*D); pe block is (tile_s, D)).
# ----------------------------------------------------------------------------
def _pe_add_kernel_aligned(x_ref, pe_ref, o_ref, *, batch, d_model):
    """D % 128 == 0: each per-batch chunk is a lane-aligned static slice.

    No replicated pe temp; every load/add/store is a dense, unmasked vreg op.
    """
    pe = pe_ref[...]                                   # (tile_s, D)
    for b in range(batch):                             # static unroll, 0-cost views
        lo = b * d_model
        o_ref[:, lo:lo + d_model] = x_ref[:, lo:lo + d_model] + pe


def _replicate_lanes(pe, reps):
    """[pe, pe, ..., pe] along lanes using O(log reps) lane concats."""
    if reps == 1:
        return pe
    half = _replicate_lanes(pe, reps // 2)
    out = jnp.concatenate([half, half], axis=-1)
    if reps % 2:
        out = jnp.concatenate([out, pe], axis=-1)
    return out


def _pe_add_kernel_replicated(x_ref, pe_ref, o_ref, *, batch):
    """D % 128 != 0: build one lane-dense pe row, then a dense add + store."""
    pe_row = _replicate_lanes(pe_ref[...], batch)      # (tile_s, B*D) temp
    o_ref[...] = x_ref[...] + pe_row


# ----------------------------------------------------------------------------
# Tiling / VMEM heuristics
# ----------------------------------------------------------------------------
def _round_up(v, m):
    return ((v + m - 1) // m) * m


def _vmem_capacity_bytes():
    try:
        return int(pltpu.get_tpu_info().vmem_capacity_bytes)
    except Exception:
        return 64 << 20          # conservative fallback: assume v7x-sized VMEM


def _choose_tile_s(S, row_bytes, target_bytes, sub, min_steps=4):
    """Rows of (the 2-D view of) x per grid step."""
    tile = max(1, int(target_bytes) // max(int(row_bytes), 1))
    # Guarantee >= min_steps grid steps when S allows: keeps the DMA pipeline
    # double-buffered and gives both v7x TensorCores work (grid=(1,) would
    # serialize DMA-in / add / DMA-out and idle one core).
    if S >= min_steps * sub:
        tile = min(tile, -(-S // min_steps))           # ceil(S / min_steps)
    tile = min(tile, S)
    return _round_up(tile, sub)   # sublane-aligned; partial tail is masked


# ----------------------------------------------------------------------------
# Wrapper
# ----------------------------------------------------------------------------
def positional_encoding_forward(x, pe_table, *, tile_s=None):
    """x: (S, B, D); pe_table: (max_len, D), ideally already in x.dtype.

    Returns x + pe_table[:S] broadcast over batch (dropout in eval mode).
    """
    S, B, D = x.shape
    max_len, d_pe = pe_table.shape
    if d_pe != D:
        raise ValueError(f"pe_table d_model {d_pe} != x d_model {D}")
    if S > max_len:
        raise ValueError(f"seq_len {S} exceeds pe_table max_len {max_len}")
    if pe_table.dtype != x.dtype:
        # Fallback only: costs an extra slice+cast pass.  Store the table in
        # the model dtype (make_pe_table(dtype=...)) to avoid it.
        pe_table = pe_table[:S].astype(x.dtype)

    itemsize = jnp.dtype(x.dtype).itemsize
    sub = 8 * max(1, 4 // itemsize)     # sublane packing: f32 8, bf16 16, i8 32
    row_bytes = B * D * itemsize

    vmem_cap = _vmem_capacity_bytes()
    v7x_class = vmem_cap <= (64 << 20)  # small VMEM <=> fastest-HBM generation
    target_bytes = (8 << 20) if v7x_class else (4 << 20)

    if tile_s is None:
        tile_s = _choose_tile_s(S, row_bytes, target_bytes, sub)
    else:
        tile_s = _round_up(min(int(tile_s), S), sub)
    grid = (pl.cdiv(S, tile_s),)

    # VMEM budget: double-buffered x-in / out / pe-in tiles, plus (replicated
    # path only) the single (tile_s, B*D) pe temp, plus headroom; capped by the
    # queried per-core VMEM capacity rather than a hard-coded v7x number.
    aligned = (D % 128 == 0)
    x_tile_bytes = tile_s * B * D * itemsize
    pe_tile_bytes = tile_s * D * itemsize
    temp_bytes = 0 if aligned else x_tile_bytes
    need = 2 * (2 * x_tile_bytes + pe_tile_bytes) + temp_bytes
    hard_cap = max(32 << 20, vmem_cap - (8 << 20))
    vmem_limit = int(min(max(need + (8 << 20), 32 << 20), hard_cap))

    if aligned:
        kernel = functools.partial(_pe_add_kernel_aligned, batch=B, d_model=D)
    else:
        kernel = functools.partial(_pe_add_kernel_replicated, batch=B)

    out2 = pl.pallas_call(
        kernel,
        out_shape=jax.ShapeDtypeStruct((S, B * D), x.dtype),
        grid_spec=pltpu.PrefetchScalarGridSpec(
            num_scalar_prefetch=0,
            grid=grid,
            in_specs=[
                pl.BlockSpec((tile_s, B * D), lambda i: (i, 0)),   # x (2-D view)
                pl.BlockSpec((tile_s, D), lambda i: (i, 0)),       # pe rows
            ],
            out_specs=pl.BlockSpec((tile_s, B * D), lambda i: (i, 0)),
        ),
        compiler_params=pltpu.CompilerParams(
            dimension_semantics=("parallel",),   # shard S tiles across TCs (v7x)
            vmem_limit_bytes=vmem_limit,
        ),
        cost_estimate=pl.CostEstimate(
            flops=S * B * D,
            transcendentals=0,
            bytes_accessed=(2 * S * B * D + S * D) * itemsize,
        ),
    )(x.reshape(S, B * D), pe_table)
    return out2.reshape(S, B, D)


# ----------------------------------------------------------------------------
# Deterministic construction of the sinusoidal table (same math as __init__).
# Note: assumes even d_model, same as the PyTorch original.  Pass the model
# dtype so the table is stored (and streamed) at that precision.
# ----------------------------------------------------------------------------
def make_pe_table(d_model, max_len=5000, dtype=jnp.float32):
    position = jnp.arange(0, max_len, dtype=jnp.float32)[:, None]        # (L, 1)
    div_term = jnp.exp(
        jnp.arange(0, d_model, 2, dtype=jnp.float32)
        * (-math.log(10000.0) / d_model)
    )                                                                     # (D/2,)
    pe = jnp.zeros((max_len, d_model), dtype=jnp.float32)
    pe = pe.at[:, 0::2].set(jnp.sin(position * div_term))
    pe = pe.at[:, 1::2].set(jnp.cos(position * div_term))
    return pe.astype(dtype)                                               # (L, D)


# ----------------------------------------------------------------------------
# Pure-JAX reference
# ----------------------------------------------------------------------------
def reference_forward(x, pe_table):
    S = x.shape[0]
    return x + pe_table[:S].astype(x.dtype)[:, None, :]


if __name__ == "__main__":
    key = jax.random.PRNGKey(0)

    # Case 1: toy module shape (seq=8, batch=2, d_model=32).
    #   D % 128 != 0 -> replicated-pe kernel; B*D = 64 (tail-masked lanes only).
    S1, B1, D1 = 8, 2, 32
    x1 = jax.random.normal(key, (S1, B1, D1), dtype=jnp.float32)
    pe1 = make_pe_table(D1, max_len=64)
    out1 = jax.block_until_ready(positional_encoding_forward(x1, pe1))
    assert out1.shape == (S1, B1, D1)
    assert jnp.allclose(out1, reference_forward(x1, pe1), atol=1e-6, rtol=1e-6)

    # Case 2: B*D == 128 (lane-dense rows) with forced tile_s=8 -> 3-step
    # pipelined grid at small shape; still the replicated-pe kernel.
    S2, B2, D2 = 24, 4, 32
    x2 = jax.random.normal(jax.random.PRNGKey(1), (S2, B2, D2), dtype=jnp.float32)
    pe2 = make_pe_table(D2, max_len=64)
    out2 = jax.block_until_ready(positional_encoding_forward(x2, pe2, tile_s=8))
    assert jnp.allclose(out2, reference_forward(x2, pe2), atol=1e-6, rtol=1e-6)

    # Case 3: D % 128 == 0 with a bf16 table stored in the model dtype ->
    # lane-aligned chunked kernel, no per-call slice/cast of pe.
    S3, B3, D3 = 16, 2, 128
    x3 = jax.random.normal(jax.random.PRNGKey(2), (S3, B3, D3), dtype=jnp.bfloat16)
    pe3 = make_pe_table(D3, max_len=64, dtype=jnp.bfloat16)
    out3 = jax.block_until_ready(positional_encoding_forward(x3, pe3))
    assert out3.dtype == jnp.bfloat16
    assert jnp.allclose(
        out3.astype(jnp.float32),
        reference_forward(x3, pe3).astype(jnp.float32),
        atol=1e-2, rtol=1e-2,
    )

    print("KERNEL_OK")
</pallas_src>

<mosaic_0001>
module attributes {stable_mosaic.version = 11 : i64} {
  func.func @_pe_add_kernel_replicated(%arg0: i32, %arg1: memref<8x64xf32, #tpu.memory_space<vmem>>, %arg2: memref<8x32xf32, #tpu.memory_space<vmem>>, %arg3: memref<8x64xf32, #tpu.memory_space<vmem>>) attributes {dimension_semantics = [#tpu.dimension_semantics<parallel>], iteration_bounds = array<i64: 1>, scalar_prefetch = 0 : i64, scratch_operands = 0 : i64, tpu.core_type = #tpu.core_type<tc>, window_params = [{transform_indices = @transform_0, window_bounds = array<i64: 8, 64>}, {transform_indices = @transform_1, window_bounds = array<i64: 8, 32>}, {transform_indices = @transform_2, window_bounds = array<i64: 8, 64>}]} {
    %c0 = arith.constant 0 : index
    %c0_0 = arith.constant 0 : index
    %0 = vector.load %arg2[%c0, %c0_0] : memref<8x32xf32, #tpu.memory_space<vmem>>, vector<8x32xf32>
    %1 = tpu.concatenate %0, %0 in 1 : vector<8x32xf32>, vector<8x32xf32> -> vector<8x64xf32>
    %c0_1 = arith.constant 0 : index
    %c0_2 = arith.constant 0 : index
    %2 = vector.load %arg1[%c0_1, %c0_2] : memref<8x64xf32, #tpu.memory_space<vmem>>, vector<8x64xf32>
    %3 = arith.addf %2, %1 : vector<8x64xf32>
    %c0_3 = arith.constant 0 : index
    %c0_4 = arith.constant 0 : index
    %4 = vector.load %arg3[%c0_3, %c0_4] : memref<8x64xf32, #tpu.memory_space<vmem>>, vector<8x64xf32>
    tpu.vector_store %arg3[%c0_3, %c0_4], %3 {strides = array<i32>} : memref<8x64xf32, #tpu.memory_space<vmem>>, vector<8x64xf32>,
    return
  }
  func.func @transform_0(%arg0: i32) -> (i32, i32) {
    %c0_i32 = arith.constant 0 : i32
    %c0_i32_0 = arith.constant 0 : i32
    return %arg0, %c0_i32 : i32, i32
  }
  func.func @transform_1(%arg0: i32) -> (i32, i32) {
    %c0_i32 = arith.constant 0 : i32
    %c0_i32_0 = arith.constant 0 : i32
    return %arg0, %c0_i32 : i32, i32
  }
  func.func @transform_2(%arg0: i32) -> (i32, i32) {
    %c0_i32 = arith.constant 0 : i32
    %c0_i32_0 = arith.constant 0 : i32
    return %arg0, %c0_i32 : i32, i32
  }
}

</mosaic_0001>

<bundles_post_ra>
// kernel: tpu_custom_call.1
= control target key start
LH: loop header
LB: loop body
LE: loop exit
PB: predicated region body
PF: predicated region fallthrough
CT: control target
= control target key end

     0   :  { %s98_s0 = inlined_call_operand.vmem [shape: f32[8,64], index: 0, kind: input, shape index: {}]   ;;  %s99_s1 = inlined_call_operand.vmem [shape: f32[64,32], index: 1, kind: input, shape index: {}]   ;;  %s100_s2 = inlined_call_operand.hbm [shape: f32[8,64], index: 2, kind: output, shape index: {}]  }
   0x1   :  { %v12_v0 = vld [vmem:[%s99_s1] sm:$0xff] }
   0x2   :  { %7 = vsyncpa [#allocation3], 0  ;;  %s63_s11 = smov 32   ;;  %vm17_vm0 = vcmask 261120   ;;  %v19_v1 = vld [vmem:[%s98_s0] sm:$0xff]  ;;  %s64_s14 = smov [#allocation2]  }
   0x3   :  { %14 = vrot.lane.b32.xlu0 %v12_v0, %s63_s11  ;;  %s29_s15 = sshll.u32 %s64_s14, 4  ;;  %vm21_vm1 = vcmask 523264   ;;  %s30_s15 = int_to_ptr.vmem [resolvable:$true] %s29_s15 }
   0x4   :  { %s39_s16 = scalar_lea.vmem %s30_s15, 128  ;;  %p44_p1 = scmp.lt.s32.totalorder %s30_s15, %s30_s15 }
   0x5   :  { %p40_p0 = scmp.ne.s32.totalorder %s30_s15, %s39_s16  ;;  %p45_p2 = scmp.lt.s32.totalorder %s39_s16, %s39_s16 }
   0x7   :  { %p46_p3 = por %p45_p2, %p44_p1 }
   0x9   :  { %p47_p4 = pnand %p46_p3, %p40_p0 }
  0x75   :  { %v15_v2 = vpop.permute.xlu0 %14 }
  0x76   :  { %v18_v3 = vsel %vm17_vm0, %v12_v0, %v15_v2 }
  0x77   :  { %v20_v4 = vadd.f32 %v19_v1, %v18_v3 }
  0x79   :  { %22 = vst.msk [vmem:[#allocation2] sm:$0xff] %vm21_vm1, %v20_v4 }
  0x7a   :  { %50 = shalt.err (!%p47_p4)
}
  0x7b   :  { %s51_s18 = scalar_lea.hbm %s100_s2, 128 }
  0x7c   :  { %p52_p5 = scmp.ne.s32.totalorder %s100_s2, %s51_s18  ;;  %p55_p6 = scmp.lt.u32.totalorder %s51_s18, %s100_s2 }
  0x7e   :  { %p57_p7 = pnand %p55_p6, %p52_p5 }
  0x80   :  { %60 = shalt.err (!%p57_p7)
}
  0x81   :  { %32 = dma.vmem_to_hbm [thread:$0]  %s30_s15, 128, %s100_s2, [#allocation3]  }
  0x82   :  { %61 = dma.done.wait [#allocation3], 128  }
  0x83   :  { %62 = vsyncadd [#allocation3], 4294967168 }
  0x84   :  { %36 = vsyncpa [#allocation3], 1 }

</bundles_post_ra>
